<compile_context>
chip_gen: v7x
topology: tpu7x:2x2x1
jax: 0.10.0
libtpu: 0.0.40
codegen_flags: <defaults>
</compile_context>

<pallas_src>
import dataclasses
from typing import Optional

import jax
import jax.numpy as jnp
from jax.experimental import pallas as pl
from jax.experimental.pallas import tpu as pltpu


# --------------------------- layout / tiling helpers ------------------------ #

TARGET_BLOCK_BYTES = 4 << 20   # ~4 MiB/step: >=95% of HBM roofline on v7x,
                               # harmless on v5e/v6e; double-buffered in+out
                               # stays far below the 48 MiB scoped VMEM limit.
LANE_CAP = 8192                # widest lane-dense store window we will try.


def _sublane_tile(dtype) -> int:
    """Native sublane tile for a dtype: 8 (4B), 16 (2B), 32 (1B)."""
    return {4: 8, 2: 16, 1: 32}.get(jnp.dtype(dtype).itemsize, 8)


def _flatten_shape(shape, start_dim, end_dim):
    """Output shape of torch.flatten(x, start_dim, end_dim)."""
    nd = len(shape)
    if nd == 0:
        return (1,)
    s = start_dim % nd
    e = end_dim % nd
    if s > e:
        raise ValueError(
            f"flatten: start_dim ({start_dim}) must be <= end_dim ({end_dim})")
    mid = 1
    for d in shape[s:e + 1]:
        mid *= d
    return tuple(shape[:s]) + (mid,) + tuple(shape[e + 1:])


def _choose_2d_view(total, sublane, lane_cap=LANE_CAP):
    """Pick a (rows, lane) factorization of `total` for a lane-dense stream.

    Preference order:
      1. widest lane (multiple of 128, <= lane_cap) with rows >= sublane and
         rows % sublane == 0 (packed, unmasked stores),
      2. widest lane with rows >= sublane,
      3. narrowest lane (most rows) otherwise.
    Returns None if total is not a multiple of 128 (caller falls back to a
    pure metadata reshape).
    """
    if total <= 0 or total % 128 != 0:
        return None
    tier1 = tier2 = tier3 = None
    for lane in range(min(lane_cap, total), 127, -128):
        if total % lane:
            continue
        rows = total // lane
        if rows >= sublane and rows % sublane == 0:
            if tier1 is None:
                tier1 = (rows, lane)
        elif rows >= sublane:
            if tier2 is None:
                tier2 = (rows, lane)
        else:
            tier3 = (rows, lane)   # keep overwriting -> ends at most-rows option
    return tier1 or tier2 or tier3


def _choose_row_block(rows, lane, itemsize, sublane,
                      target_bytes=TARGET_BLOCK_BYTES):
    """Rows per grid step: ~target_bytes, sublane-aligned, and (when possible)
    an exact divisor of `rows` so there is no ragged last tile."""
    target_rows = max(1, target_bytes // (lane * itemsize))
    if target_rows >= rows:
        return rows                                    # full extent: always legal
    b = (target_rows // sublane) * sublane
    while b >= sublane:                                # sublane-aligned exact divisor
        if rows % b == 0:
            return b
        b -= sublane
    # No aligned exact divisor: accept a ragged tail but keep the full blocks
    # sublane-aligned so they store packed/unmasked.
    return max(min(sublane, rows), (target_rows // sublane) * sublane)


# ----------------------------- Pallas kernels ------------------------------- #

def _flat_copy_kernel(x_ref, o_ref):
    # Lane-dense streaming copy; all layout work happens in the wrapper.
    o_ref[...] = x_ref[...]


def _make_flatten_quant_kernel(eps, max_value):
    """Fused flatten + primary log-quantization (LogQuantUtils.quantize_tensor's
    q1 / s outputs). The copy is HBM-bound, so this math rides idle VPU/EUP slots."""
    max_value_f = float(max_value)

    def kernel(scale_ref, x_ref, q1_ref, s_ref):
        x = x_ref[...].astype(jnp.float32)
        inv_scale = 1.0 / jnp.maximum(scale_ref[0], eps)     # scalar from SMEM
        s = jnp.where(x < 0, -1.0, 1.0)                      # sign, 0 -> +1
        normalized = jnp.abs(x) * inv_scale + eps
        q1 = jnp.clip(jnp.round(-jnp.log2(normalized)), 0.0, max_value_f)
        q1_ref[...] = q1.astype(q1_ref.dtype)
        s_ref[...] = s.astype(s_ref.dtype)

    return kernel


# ------------------------------ wrappers ------------------------------------ #

def pallas_flatten(x: jax.Array, start_dim: int, end_dim: int = -1) -> jax.Array:
    """torch.flatten(x, start_dim, end_dim) with the data copy done in Pallas.

    NOTE: for a bare flatten the recommended path is jnp.reshape (metadata only,
    zero bytes moved). Keep this kernel only as an explicit streaming anchor.
    """
    out_shape = _flatten_shape(x.shape, start_dim, end_dim)
    total = int(x.size)
    sublane = _sublane_tile(x.dtype)
    view = _choose_2d_view(total, sublane)
    if view is None:
        return jnp.reshape(x, out_shape)          # metadata-only fallback
    rows, lane = view
    itemsize = jnp.dtype(x.dtype).itemsize
    row_block = _choose_row_block(rows, lane, itemsize, sublane)
    grid = (pl.cdiv(rows, row_block),)

    x2d = jnp.reshape(x, (rows, lane))            # free metadata reshape
    out2d = pl.pallas_call(
        _flat_copy_kernel,
        out_shape=jax.ShapeDtypeStruct((rows, lane), x.dtype),
        grid=grid,
        in_specs=[pl.BlockSpec((row_block, lane), lambda i: (i, 0))],
        out_specs=pl.BlockSpec((row_block, lane), lambda i: (i, 0)),
        compiler_params=pltpu.CompilerParams(
            dimension_semantics=("parallel",),    # disjoint windows
            vmem_limit_bytes=48 << 20,
        ),
        cost_estimate=pl.CostEstimate(
            flops=0, transcendentals=0, bytes_accessed=2 * total * itemsize),
    )(x2d)
    return jnp.reshape(out2d, out_shape)          # free metadata reshape


def pallas_flatten_quantize(x: jax.Array, scale: jax.Array, start_dim: int,
                            end_dim: int = -1, config: "LogQuantConfig" = None):
    """Fused: flatten(x) + primary log-quantization (q1 int8, sign s) in one pass.

    Returns (q1, s) with the flattened shape. The data-dependent residual pass
    (q2 / s_err, gated on a global torch.any predicate) is left to the caller.
    """
    config = config if config is not None else LogQuantConfig()
    out_shape = _flatten_shape(x.shape, start_dim, end_dim)
    total = int(x.size)
    # sublane tile must also suit the packed int8 q1 output.
    sublane = max(_sublane_tile(x.dtype), _sublane_tile(jnp.int8))
    view = _choose_2d_view(total, sublane)
    if view is None:
        # Non-128-friendly sizes: plain-JAX math on the metadata-reshaped array.
        xf = jnp.reshape(x, out_shape).astype(jnp.float32)
        sc = jnp.maximum(jnp.reshape(scale, ()).astype(jnp.float32), config.eps)
        s = jnp.where(xf < 0, -1.0, 1.0).astype(x.dtype)
        q1 = jnp.clip(jnp.round(-jnp.log2(jnp.abs(xf) / sc + config.eps)),
                      0, config.max_value).astype(jnp.int8)
        return q1, s

    rows, lane = view
    itemsize = jnp.dtype(x.dtype).itemsize
    row_block = _choose_row_block(rows, lane, itemsize, sublane)
    grid = (pl.cdiv(rows, row_block),)

    x2d = jnp.reshape(x, (rows, lane))
    scale1 = jnp.reshape(scale, (1,)).astype(jnp.float32)
    kernel = _make_flatten_quant_kernel(config.eps, config.max_value)

    q1_2d, s_2d = pl.pallas_call(
        kernel,
        out_shape=(jax.ShapeDtypeStruct((rows, lane), jnp.int8),
                   jax.ShapeDtypeStruct((rows, lane), x.dtype)),
        grid=grid,
        in_specs=[pl.BlockSpec(memory_space=pltpu.MemorySpace.SMEM),  # scale scalar
                  pl.BlockSpec((row_block, lane), lambda i: (i, 0))],
        out_specs=(pl.BlockSpec((row_block, lane), lambda i: (i, 0)),
                   pl.BlockSpec((row_block, lane), lambda i: (i, 0))),
        compiler_params=pltpu.CompilerParams(
            dimension_semantics=("parallel",),
            vmem_limit_bytes=48 << 20,
        ),
        cost_estimate=pl.CostEstimate(
            flops=6 * total,
            transcendentals=total,
            bytes_accessed=total * itemsize + total * 1 + total * itemsize),
    )(scale1, x2d)
    return jnp.reshape(q1_2d, out_shape), jnp.reshape(s_2d, out_shape)


# --------------------------- module equivalents ----------------------------- #

@dataclasses.dataclass
class LogQuantConfig:
    momentum: float = 0.1
    threshold: float = 1e-5
    eps: float = 1e-8
    bits: int = 8

    @property
    def max_value(self) -> int:
        return 2 ** self.bits - 1


@dataclasses.dataclass
class LogQuantizedTensor:
    q1: jax.Array
    a: jax.Array
    s: jax.Array
    q2: Optional[jax.Array]
    s_err: Optional[jax.Array]
    r: Optional[jax.Array] = None


class LogQuantizedFlatten:
    """JAX/Pallas port of LogQuantizedFlatten (forward pass only).

    Default (use_pallas=False) is the zero-cost metadata reshape — flatten of a
    contiguous array moves no bytes, so a copy kernel can never win. Set
    use_pallas=True to route the flatten through the explicit Pallas streaming
    copy (useful only as a fusion anchor when more compute is added in-kernel;
    see pallas_flatten_quantize for the fused log-quantization variant).
    """

    def __init__(self, start_dim, end_dim=-1, config=None, use_pallas=False):
        self.config = config if config is not None else LogQuantConfig()
        self.start_dim = start_dim
        self.end_dim = end_dim
        self.activation_quantization = False
        self.use_pallas = use_pallas
        # Buffers from LogQuantizedOperator.__init__ (unused by this forward).
        # TODO(synk): update_max_abs_stats / quantize_log_output (training-time
        # running-stat EMA + residual q2/s_err quantization) are not exercised
        # by this forward and are not ported.
        self.running_max_abs = jnp.ones((1,), jnp.float32) * self.config.eps
        self.num_batches_tracked = jnp.array(0, jnp.int32)

    def _flatten(self, x: jax.Array) -> jax.Array:
        if self.use_pallas:
            return pallas_flatten(x, self.start_dim, self.end_dim)
        return jnp.reshape(x, _flatten_shape(x.shape, self.start_dim, self.end_dim))

    def __call__(self, inp):
        if self.activation_quantization:
            assert isinstance(inp, LogQuantizedTensor)
            q1 = self._flatten(inp.q1)
            r = None if inp.r is None else self._flatten(inp.r)
            q2 = None if inp.q2 is None else self._flatten(inp.q2)
            return LogQuantizedTensor(q1, inp.a, inp.s, q2, inp.s_err, r)
        else:
            assert isinstance(inp, jax.Array)
            return self._flatten(inp)


# ---------------------------------- main ------------------------------------ #

if __name__ == "__main__":
    key = jax.random.PRNGKey(0)
    N, C, H, W = 2, 4, 16, 16
    x = jax.random.normal(key, (N, C, H, W), dtype=jnp.float32)
    ref = jnp.reshape(x, (N, C * H * W))

    # 1) Default module path: zero-cost metadata reshape (perf-review default).
    mod = LogQuantizedFlatten(start_dim=1, end_dim=-1)
    out = jax.block_until_ready(mod(x))
    assert out.shape == (N, C * H * W) and out.dtype == x.dtype
    assert bool(jnp.array_equal(out, ref)), "metadata flatten mismatch"

    # 2) Explicit Pallas streaming-copy flatten (bit-exact).
    mod_p = LogQuantizedFlatten(start_dim=1, end_dim=-1, use_pallas=True)
    out_p = jax.block_until_ready(mod_p(x))
    assert bool(jnp.array_equal(out_p, ref)), "Pallas flatten mismatch"

    # Non-128-aligned shape exercises the metadata fallback.
    x_odd = jax.random.normal(key, (2, 3, 7, 7), dtype=jnp.float32)
    out_odd = jax.block_until_ready(mod_p(x_odd))
    assert bool(jnp.array_equal(out_odd, jnp.reshape(x_odd, (2, 3 * 7 * 7))))

    # 3) Fused flatten + log-quantization kernel (the actual fusion anchor).
    cfg = LogQuantConfig()
    scale = jnp.maximum(jnp.max(jnp.abs(x)), cfg.eps).reshape(1)
    q1_k, s_k = pallas_flatten_quantize(x, scale, start_dim=1, end_dim=-1, config=cfg)
    q1_k = jax.block_until_ready(q1_k)

    # Pure-JAX reference of the same fused math.
    xf = ref.astype(jnp.float32)
    sc = jnp.maximum(scale.reshape(()), cfg.eps)
    s_r = jnp.where(xf < 0, -1.0, 1.0).astype(x.dtype)
    q1_r = jnp.clip(jnp.round(-jnp.log2(jnp.abs(xf) / sc + cfg.eps)),
                    0, cfg.max_value).astype(jnp.int8)
    assert q1_k.shape == (N, C * H * W) and q1_k.dtype == jnp.int8
    assert bool(jnp.array_equal(s_k, s_r)), "sign mismatch"
    diff = jnp.abs(q1_k.astype(jnp.int32) - q1_r.astype(jnp.int32))
    assert int(jnp.max(diff)) <= 1, "q1 mismatch > 1 level"
    assert float(jnp.mean((diff > 0).astype(jnp.float32))) < 1e-2, "too many q1 mismatches"

    # 4) LogQuantizedTensor path (int8 q1 flatten through the Pallas copy).
    mod_p.activation_quantization = True
    qt = LogQuantizedTensor(q1=q1_r.reshape(N, C, H, W), a=scale, s=s_r.reshape(N, C, H, W),
                            q2=None, s_err=None, r=x)
    qo = mod_p(qt)
    jax.block_until_ready(qo.q1)
    assert qo.q1.shape == (N, C * H * W) and qo.q1.dtype == jnp.int8
    assert bool(jnp.array_equal(qo.q1, q1_r))
    assert bool(jnp.array_equal(qo.r, ref))

    print("KERNEL_OK")
</pallas_src>

<mosaic_0001>
module attributes {stable_mosaic.version = 11 : i64} {
  func.func @_flat_copy_kernel(%arg0: i32, %arg1: memref<8x256xf32, #tpu.memory_space<vmem>>, %arg2: memref<8x256xf32, #tpu.memory_space<vmem>>) attributes {dimension_semantics = [#tpu.dimension_semantics<parallel>], iteration_bounds = array<i64: 1>, scalar_prefetch = 0 : i64, scratch_operands = 0 : i64, tpu.core_type = #tpu.core_type<tc>, window_params = [{transform_indices = @transform_0, window_bounds = array<i64: 8, 256>}, {transform_indices = @transform_1, window_bounds = array<i64: 8, 256>}]} {
    %c0 = arith.constant 0 : index
    %c0_0 = arith.constant 0 : index
    %0 = vector.load %arg1[%c0, %c0_0] : memref<8x256xf32, #tpu.memory_space<vmem>>, vector<8x256xf32>
    %c0_1 = arith.constant 0 : index
    %c0_2 = arith.constant 0 : index
    %1 = vector.load %arg2[%c0_1, %c0_2] : memref<8x256xf32, #tpu.memory_space<vmem>>, vector<8x256xf32>
    tpu.vector_store %arg2[%c0_1, %c0_2], %0 {strides = array<i32>} : memref<8x256xf32, #tpu.memory_space<vmem>>, vector<8x256xf32>,
    return
  }
  func.func @transform_0(%arg0: i32) -> (i32, i32) {
    %c0_i32 = arith.constant 0 : i32
    %c0_i32_0 = arith.constant 0 : i32
    return %arg0, %c0_i32 : i32, i32
  }
  func.func @transform_1(%arg0: i32) -> (i32, i32) {
    %c0_i32 = arith.constant 0 : i32
    %c0_i32_0 = arith.constant 0 : i32
    return %arg0, %c0_i32 : i32, i32
  }
}

</mosaic_0001>

<bundles_post_ra>
// kernel: tpu_custom_call.1
= control target key start
LH: loop header
LB: loop body
LE: loop exit
PB: predicated region body
PF: predicated region fallthrough
CT: control target
= control target key end

     0   :  { %6 = vsyncpa [#allocation3], 0  ;;  %s126_s0 = inlined_call_operand.hbm [shape: f32[8,256], index: 0, kind: input, shape index: {}]   ;;  %s127_s1 = inlined_call_operand.hbm [shape: f32[8,256], index: 1, kind: output, shape index: {}]  }
   0x1   :  { %7 = vsyncpa [#allocation4], 0  ;;  %s90_s6 = smov [#allocation2]   ;;  %s42_s10 = scalar_lea.hbm %s126_s0, 256 }
   0x2   :  { %s14_s7 = sshll.u32 %s90_s6, 4  ;;  %p43_p0 = scmp.ne.s32.totalorder %s126_s0, %s42_s10  ;;  %s15_s7 = int_to_ptr.vmem [resolvable:$true] %s14_s7 }
   0x3   :  { %p46_p1 = scmp.lt.u32.totalorder %s42_s10, %s126_s0 }
   0x5   :  { %p48_p2 = pnand %p46_p1, %p43_p0 }
   0x7   :  { %51 = shalt.err (!%p48_p2)
}
   0x8   :  { %s52_s15 = scalar_lea.vmem %s15_s7, 256  ;;  %p57_p4 = scmp.lt.s32.totalorder %s15_s7, %s15_s7 }
   0x9   :  { %p53_p3 = scmp.ne.s32.totalorder %s15_s7, %s52_s15  ;;  %p58_p5 = scmp.lt.s32.totalorder %s52_s15, %s52_s15 }
   0xb   :  { %p59_p6 = por %p58_p5, %p57_p4 }
   0xd   :  { %p60_p7 = pnand %p59_p6, %p53_p3 }
   0xf   :  { %63 = shalt.err (!%p60_p7)
}
  0x10   :  { %17 = dma.hbm_to_vmem [thread:$0]  %s126_s0, 256, %s15_s7, [#allocation3]  }
  0x11   :  { %86 = dma.done.wait [#allocation3], 256  }
  0x12   :  { %87 = vsyncadd [#allocation3], 4294967040  ;;  %s91_s18 = smov [#allocation5]   ;;  %v21_v0 = vld [vmem:[#allocation2] sm:$0xff]  ;;  %v22_v1 = vld [vmem:[#allocation2 + $0x8] sm:$0xff] }
  0x13   :  { %s31_s19 = sshll.u32 %s91_s18, 4  ;;  %23 = vst [vmem:[#allocation5] sm:$0xff] %v21_v0  ;;  %24 = vst [vmem:[#allocation5 + $0x8] sm:$0xff] %v22_v1  ;;  %s32_s19 = int_to_ptr.vmem [resolvable:$true] %s31_s19 }
  0x14   :  { %s64_s20 = scalar_lea.vmem %s32_s19, 256  ;;  %p69_p9 = scmp.lt.s32.totalorder %s32_s19, %s32_s19 }
  0x15   :  { %p65_p8 = scmp.ne.s32.totalorder %s32_s19, %s64_s20  ;;  %p70_p10 = scmp.lt.s32.totalorder %s64_s20, %s64_s20 }
  0x17   :  { %p71_p11 = por %p70_p10, %p69_p9 }
  0x19   :  { %p72_p12 = pnand %p71_p11, %p65_p8 }
  0x1b   :  { %75 = shalt.err (!%p72_p12)
}
  0x1c   :  { %s76_s0 = scalar_lea.hbm %s127_s1, 256 }
  0x1d   :  { %p77_p13 = scmp.ne.s32.totalorder %s127_s1, %s76_s0  ;;  %p80_p0 = scmp.lt.u32.totalorder %s76_s0, %s127_s1 }
  0x1f   :  { %p82_p1 = pnand %p80_p0, %p77_p13 }
  0x21   :  { %85 = shalt.err (!%p82_p1)
}
  0x22   :  { %34 = dma.vmem_to_hbm [thread:$0]  %s32_s19, 256, %s127_s1, [#allocation4]  }
  0x23   :  { %88 = dma.done.wait [#allocation4], 256  }
  0x24   :  { %89 = vsyncadd [#allocation4], 4294967040 }
  0x25   :  { %38 = vsyncpa [#allocation3], 1 }
  0x26   :  { %39 = vsyncpa [#allocation4], 1 }

</bundles_post_ra>
